<compile_context>
chip_gen: v6e
topology: v6e:2x2x1
jax: 0.10.0
libtpu: 0.0.40
codegen_flags: <defaults>
</compile_context>

<pallas_src>
import functools

import jax
import jax.numpy as jnp
from jax.experimental import pallas as pl
from jax.experimental.pallas import tpu as pltpu


_BIG = 1e30  # padded rows/cols produce squared distances >= _BIG -> never win a min


def _round_up(x, m):
    return ((x + m - 1) // m) * m


def _chamfer_kernel(p1_ref, p2_ref, d1_ref, d2_ref, dmin_ref):
    # p1_ref  : (1, TN, 8)   augmented cloud-1 points for this N tile
    # p2_ref  : (1, 8, TM)   augmented, coordinate-major cloud-2 points (M tile)
    # d1_ref  : (1, 1, TN)   min_j ||a_i - b_j||^2 for this (b, n) row (lane dense)
    # d2_ref  : (1, 1, 1, TM) per-N-tile partial min_i ||a_i - b_j||^2
    # dmin_ref: (TN, 128)    running row-min accumulator across M tiles (VMEM)
    m = pl.program_id(2)
    last_m = pl.num_programs(2) - 1

    a = p1_ref[0]     # (TN, 8)
    bt = p2_ref[0]    # (8, TM)

    # sq[i, j] = |a_i|^2 + |b_j|^2 - 2 a_i.b_j, entirely on the MXU (K=8).
    sq = jnp.dot(a, bt, preferred_element_type=jnp.float32)   # (TN, TM)

    # Cloud2 -> cloud1 partial: min over the TN rows of this tile (lane dense).
    d2_ref[0, 0, 0, :] = jnp.min(sq, axis=0)

    # Cloud1 -> cloud2: fold TM lanes down to one 128-lane group with
    # elementwise VPU mins; defer the single cross-lane reduce to the last M step.
    tm = sq.shape[1]
    part = sq[:, 0:128]
    for g in range(1, tm // 128):
        part = jnp.minimum(part, sq[:, g * 128:(g + 1) * 128])

    @pl.when(m == 0)
    def _():
        dmin_ref[...] = part

    @pl.when(m != 0)
    def _():
        dmin_ref[...] = jnp.minimum(dmin_ref[...], part)

    @pl.when(m == last_m)
    def _():
        d1_ref[0, 0, :] = jnp.min(dmin_ref[...], axis=1)


def _augment_cloud1(pcs1, n_pad):
    """(B, N, 3) -> (B, n_pad, 8), rows [x, y, z, |p|^2, 1, 0, 0, 0]."""
    B, N, _ = pcs1.shape
    sqnorm = jnp.sum(pcs1 * pcs1, axis=-1, keepdims=True)
    ones = jnp.ones((B, N, 1), jnp.float32)
    zeros = jnp.zeros((B, N, 3), jnp.float32)
    aug = jnp.concatenate([pcs1, sqnorm, ones, zeros], axis=-1)   # (B, N, 8)
    if n_pad > N:
        pad_row = jnp.array([0., 0., 0., _BIG, 1., 0., 0., 0.], jnp.float32)
        pad = jnp.broadcast_to(pad_row, (B, n_pad - N, 8))
        aug = jnp.concatenate([aug, pad], axis=1)
    return aug


def _augment_cloud2(pcs2, m_pad):
    """(B, M, 3) -> coordinate-major (B, 8, m_pad), columns
    [-2x, -2y, -2z, 1, |p|^2, 0, 0, 0] so dot(aug1_row, aug2_col) = |a-b|^2."""
    B, M, _ = pcs2.shape
    sqnorm = jnp.sum(pcs2 * pcs2, axis=-1, keepdims=True)
    ones = jnp.ones((B, M, 1), jnp.float32)
    zeros = jnp.zeros((B, M, 3), jnp.float32)
    aug = jnp.concatenate([-2.0 * pcs2, ones, sqnorm, zeros], axis=-1)  # (B, M, 8)
    if m_pad > M:
        pad_col = jnp.array([0., 0., 0., 1., _BIG, 0., 0., 0.], jnp.float32)
        pad = jnp.broadcast_to(pad_col, (B, m_pad - M, 8))
        aug = jnp.concatenate([aug, pad], axis=1)
    return jnp.transpose(aug, (0, 2, 1))                               # (B, 8, m_pad)


@functools.partial(jax.jit, static_argnames=("tn", "tm"))
def chamfer_distance(pcs1, pcs2, *, tn=256, tm=1024):
    """pcs1: (B, N, 3) float32, pcs2: (B, M, 3) float32 -> scalar float32."""
    B, N, D = pcs1.shape
    B2, M, D2 = pcs2.shape
    assert D == 3 and D2 == 3 and B2 == B
    assert tn % 128 == 0 and tm % 128 == 0

    # Tile sizes (shrink for small clouds; keep alignment constraints).
    TN = tn if N >= tn else _round_up(N, 8)
    TM = tm if M >= tm else _round_up(M, 128)
    n_pad = _round_up(N, TN)
    m_pad = _round_up(M, TM)
    nt = n_pad // TN
    mt = m_pad // TM

    p1_aug = _augment_cloud1(pcs1.astype(jnp.float32), n_pad)   # (B, n_pad, 8)
    p2_aug = _augment_cloud2(pcs2.astype(jnp.float32), m_pad)   # (B, 8, m_pad)

    d1_sq, d2_part = pl.pallas_call(
        _chamfer_kernel,
        out_shape=(
            jax.ShapeDtypeStruct((B, 1, n_pad), jnp.float32),
            jax.ShapeDtypeStruct((B, nt, 1, m_pad), jnp.float32),
        ),
        grid_spec=pltpu.PrefetchScalarGridSpec(
            num_scalar_prefetch=0,
            grid=(B, nt, mt),
            in_specs=[
                pl.BlockSpec((1, TN, 8), lambda b, n, m: (b, n, 0)),
                pl.BlockSpec((1, 8, TM), lambda b, n, m: (b, 0, m)),
            ],
            out_specs=[
                pl.BlockSpec((1, 1, TN), lambda b, n, m: (b, 0, n)),
                pl.BlockSpec((1, 1, 1, TM), lambda b, n, m: (b, n, 0, m)),
            ],
            scratch_shapes=[pltpu.VMEM((TN, 128), jnp.float32)],
        ),
        compiler_params=pltpu.CompilerParams(
            dimension_semantics=("parallel", "parallel", "arbitrary"),
            vmem_limit_bytes=48 * 1024 * 1024,
        ),
    )(p1_aug, p2_aug)

    # Plain-JAX glue: drop padding, finish the d2 reduction over N tiles,
    # clamp tiny negative values from the |a|^2+|b|^2-2ab expansion, sqrt+mean.
    d1 = jnp.maximum(d1_sq[:, 0, :N], 0.0)                               # (B, N)
    d2 = jnp.maximum(jnp.min(d2_part[:, :, 0, :], axis=1)[:, :M], 0.0)   # (B, M)
    return (jnp.mean(jnp.sqrt(d1)) + jnp.mean(jnp.sqrt(d2))) * 0.5


def _chamfer_reference(pcs1, pcs2):
    diff = pcs1[:, :, None, :] - pcs2[:, None, :, :]          # (B, N, M, 3)
    sq = jnp.sum(diff * diff, axis=-1)                        # (B, N, M)
    d1 = jnp.sqrt(jnp.min(sq, axis=2))                        # (B, N)
    d2 = jnp.sqrt(jnp.min(sq, axis=1))                        # (B, M)
    return (jnp.mean(d1) + jnp.mean(d2)) / 2.0


if __name__ == "__main__":
    key = jax.random.PRNGKey(0)
    k1, k2 = jax.random.split(key)

    # Small case (single tile per batch element, ragged M padded to 128).
    B, N, M = 2, 16, 24
    pcs1 = jax.random.normal(k1, (B, N, 3), dtype=jnp.float32)
    pcs2 = jax.random.normal(k2, (B, M, 3), dtype=jnp.float32)
    out = jax.block_until_ready(chamfer_distance(pcs1, pcs2))
    ref = jax.block_until_ready(_chamfer_reference(pcs1, pcs2))
    assert jnp.allclose(out, ref, atol=1e-5, rtol=1e-4), (out, ref)

    # Multi-tile case: exercises N/M tiling, the running-min accumulator over
    # M tiles, the partial d2 reduction over N tiles, and ragged-edge padding.
    B2, N2, M2 = 2, 150, 300
    k3, k4 = jax.random.split(k2)
    pcs1b = jax.random.normal(k3, (B2, N2, 3), dtype=jnp.float32)
    pcs2b = jax.random.normal(k4, (B2, M2, 3), dtype=jnp.float32)
    out2 = jax.block_until_ready(chamfer_distance(pcs1b, pcs2b, tn=128, tm=128))
    ref2 = jax.block_until_ready(_chamfer_reference(pcs1b, pcs2b))
    assert jnp.allclose(out2, ref2, atol=1e-5, rtol=1e-4), (out2, ref2)

    print("KERNEL_OK")
</pallas_src>

<mosaic_0001>
module attributes {stable_mosaic.version = 11 : i64} {
  func.func @_chamfer_kernel(%arg0: i32, %arg1: i32, %arg2: i32, %arg3: memref<1x16x8xf32, #tpu.memory_space<vmem>>, %arg4: memref<1x8x128xf32, #tpu.memory_space<vmem>>, %arg5: memref<1x1x16xf32, #tpu.memory_space<vmem>>, %arg6: memref<1x1x1x128xf32, #tpu.memory_space<vmem>>, %arg7: memref<16x128xf32, #tpu.memory_space<vmem>>) attributes {dimension_semantics = [#tpu.dimension_semantics<parallel>, #tpu.dimension_semantics<parallel>, #tpu.dimension_semantics<arbitrary>], iteration_bounds = array<i64: 2, 1, 1>, scalar_prefetch = 0 : i64, scratch_operands = 1 : i64, tpu.core_type = #tpu.core_type<tc>, window_params = [{transform_indices = @transform_0, window_bounds = array<i64: 1, 16, 8>}, {transform_indices = @transform_1, window_bounds = array<i64: 1, 8, 128>}, {transform_indices = @transform_2, window_bounds = array<i64: 1, 1, 16>}, {transform_indices = @transform_3, window_bounds = array<i64: 1, 1, 1, 128>}]} {
    %c0 = arith.constant 0 : index
    %c0_0 = arith.constant 0 : index
    %c0_1 = arith.constant 0 : index
    %0 = vector.load %arg3[%c0, %c0_0, %c0_1] : memref<1x16x8xf32, #tpu.memory_space<vmem>>, vector<1x16x8xf32>
    %1 = vector.shape_cast %0 : vector<1x16x8xf32> to vector<16x8xf32>
    %c0_2 = arith.constant 0 : index
    %c0_3 = arith.constant 0 : index
    %c0_4 = arith.constant 0 : index
    %2 = vector.load %arg4[%c0_2, %c0_3, %c0_4] : memref<1x8x128xf32, #tpu.memory_space<vmem>>, vector<1x8x128xf32>
    %3 = vector.shape_cast %2 : vector<1x8x128xf32> to vector<8x128xf32>
    %cst = arith.constant dense<0.000000e+00> : vector<16x128xf32>
    %4 = tpu.matmul %1, %3, %cst {dimension_numbers = #tpu.dot_dimension_numbers<[1], [0], [0], [1], [0, 0, 1, 1], [], []>} : vector<16x8xf32>, vector<8x128xf32>, vector<16x128xf32> -> vector<16x128xf32>
    %cst_5 = arith.constant dense<0x7F800000> : vector<128xf32>
    %5 = vector.multi_reduction <minimumf>, %4, %cst_5 [0] : vector<16x128xf32> to vector<128xf32>
    %c0_6 = arith.constant 0 : index
    %c0_7 = arith.constant 0 : index
    %c0_8 = arith.constant 0 : index
    %c0_9 = arith.constant 0 : index
    %6 = vector.load %arg6[%c0_6, %c0_7, %c0_8, %c0_9] : memref<1x1x1x128xf32, #tpu.memory_space<vmem>>, vector<1x1x1x128xf32>
    %7 = vector.shape_cast %6 : vector<1x1x1x128xf32> to vector<128xf32>
    %8 = vector.shape_cast %5 : vector<128xf32> to vector<1x1x1x128xf32>
    tpu.vector_store %arg6[%c0_6, %c0_7, %c0_8, %c0_9], %8 {strides = array<i32>} : memref<1x1x1x128xf32, #tpu.memory_space<vmem>>, vector<1x1x1x128xf32>,
    %c0_i32 = arith.constant 0 : i32
    %9 = arith.cmpi eq, %arg2, %c0_i32 : i32
    %10 = arith.extui %9 : i1 to i32
    %c0_i32_10 = arith.constant 0 : i32
    %11 = arith.cmpi ne, %10, %c0_i32_10 : i32
    scf.if %11 {
      %c0_15 = arith.constant 0 : index
      %c0_16 = arith.constant 0 : index
      %18 = vector.load %arg7[%c0_15, %c0_16] : memref<16x128xf32, #tpu.memory_space<vmem>>, vector<16x128xf32>
      tpu.vector_store %arg7[%c0_15, %c0_16], %4 {strides = array<i32>} : memref<16x128xf32, #tpu.memory_space<vmem>>, vector<16x128xf32>,
    } else {
    }
    %c0_i32_11 = arith.constant 0 : i32
    %12 = arith.cmpi ne, %arg2, %c0_i32_11 : i32
    %13 = arith.extui %12 : i1 to i32
    %c0_i32_12 = arith.constant 0 : i32
    %14 = arith.cmpi ne, %13, %c0_i32_12 : i32
    scf.if %14 {
      %c0_15 = arith.constant 0 : index
      %c0_16 = arith.constant 0 : index
      %18 = vector.load %arg7[%c0_15, %c0_16] : memref<16x128xf32, #tpu.memory_space<vmem>>, vector<16x128xf32>
      %19 = arith.minimumf %18, %4 : vector<16x128xf32>
      %c0_17 = arith.constant 0 : index
      %c0_18 = arith.constant 0 : index
      %20 = vector.load %arg7[%c0_17, %c0_18] : memref<16x128xf32, #tpu.memory_space<vmem>>, vector<16x128xf32>
      tpu.vector_store %arg7[%c0_17, %c0_18], %19 {strides = array<i32>} : memref<16x128xf32, #tpu.memory_space<vmem>>, vector<16x128xf32>,
    } else {
    }
    %c0_i32_13 = arith.constant 0 : i32
    %15 = arith.cmpi eq, %arg2, %c0_i32_13 : i32
    %16 = arith.extui %15 : i1 to i32
    %c0_i32_14 = arith.constant 0 : i32
    %17 = arith.cmpi ne, %16, %c0_i32_14 : i32
    scf.if %17 {
      %c0_15 = arith.constant 0 : index
      %c0_16 = arith.constant 0 : index
      %18 = vector.load %arg7[%c0_15, %c0_16] : memref<16x128xf32, #tpu.memory_space<vmem>>, vector<16x128xf32>
      %cst_17 = arith.constant dense<0x7F800000> : vector<16xf32>
      %19 = vector.multi_reduction <minimumf>, %18, %cst_17 [1] : vector<16x128xf32> to vector<16xf32>
      %c0_18 = arith.constant 0 : index
      %c0_19 = arith.constant 0 : index
      %c0_20 = arith.constant 0 : index
      %20 = vector.load %arg5[%c0_18, %c0_19, %c0_20] : memref<1x1x16xf32, #tpu.memory_space<vmem>>, vector<1x1x16xf32>
      %21 = vector.shape_cast %20 : vector<1x1x16xf32> to vector<16xf32>
      %22 = vector.shape_cast %19 : vector<16xf32> to vector<1x1x16xf32>
      tpu.vector_store %arg5[%c0_18, %c0_19, %c0_20], %22 {strides = array<i32>} : memref<1x1x16xf32, #tpu.memory_space<vmem>>, vector<1x1x16xf32>,
    } else {
    }
    return
  }
  func.func @transform_0(%arg0: i32, %arg1: i32, %arg2: i32) -> (i32, i32, i32) {
    %c0_i32 = arith.constant 0 : i32
    %c0_i32_0 = arith.constant 0 : i32
    return %arg0, %arg1, %c0_i32 : i32, i32, i32
  }
  func.func @transform_1(%arg0: i32, %arg1: i32, %arg2: i32) -> (i32, i32, i32) {
    %c0_i32 = arith.constant 0 : i32
    %c0_i32_0 = arith.constant 0 : i32
    return %arg0, %c0_i32, %arg2 : i32, i32, i32
  }
  func.func @transform_2(%arg0: i32, %arg1: i32, %arg2: i32) -> (i32, i32, i32) {
    %c0_i32 = arith.constant 0 : i32
    %c0_i32_0 = arith.constant 0 : i32
    return %arg0, %c0_i32, %arg1 : i32, i32, i32
  }
  func.func @transform_3(%arg0: i32, %arg1: i32, %arg2: i32) -> (i32, i32, i32, i32) {
    %c0_i32 = arith.constant 0 : i32
    %c0_i32_0 = arith.constant 0 : i32
    return %arg0, %arg1, %c0_i32, %arg2 : i32, i32, i32, i32
  }
}

</mosaic_0001>

<bundles_post_ra>
// kernel: chamfer_distance.1
= control target key start
LH: loop header
LB: loop body
LE: loop exit
PB: predicated region body
PF: predicated region fallthrough
CT: control target
= control target key end

     0   :  { %s622_s12 = smov 0   ;;  %s624_s13 = smov 0   ;;  %s667_s0 = inlined_call_operand.vmem [shape: f32[2,16,8], index: 0, kind: input, shape index: {}]   ;;  %s668_s1 = inlined_call_operand.vmem [shape: f32[2,8,128], index: 1, kind: input, shape index: {}]   ;;  %s669_s2 = inlined_call_operand.vmem [shape: f32[2,1,16], index: 2, kind: output, shape index: {0}]   ;;  %s670_s3 = inlined_call_operand.vmem [shape: f32[2,1,1,128], index: 3, kind: output, shape index: {1}]  }
   0x1   :  { %s626_s14 = smov 0  }
   0x2 LB: > { %s33_s15 = sadd.s32 1, %s596_s13  ;;  %p537_p0 = scmp.ge.s32.totalorder %s600_s14, 1  ;;  %s600_s14 = sphi %s626_s14, %s14_s14   ;;  %s596_s13 = sphi %s624_s13, %s672_s13   ;;  %s592_s12 = sphi %s622_s12, %s671_s12  }
   0x3   : > { %p35_p1 = scmp.ge.s32.totalorder %s33_s15, 2  ;;  %p186_p2 = scmp.lt.s32.totalorder %s600_s14, 3 }
   0x5   : > { %s674_s15 = smov (%p35_p1, %s33_s15), 0  ;;  %p187_p3 = pnand %p537_p0, %p186_p2 }
   0x6   : > { %p232_p4 = scmp.lt.s32.totalorder (!%p187_p3), %s592_s12, 1 }
   0x7   : > { %190 = sbr.rel (%p187_p3) target bundleno = 359 (0x167), region = 28 }
   0xc   : > { %s676_s12 = smov (!%p232_p4, %s592_s12), 1  ;;  %vm266_vm0 = vcmask 64512   ;;  %v383_v12 = vlaneseq  ;;  %vm394_vm1 = vcmask 130112   ;;  %vm397_vm2 = vcmask 122880  }
   0xd   : > { %s540_s16 = sshll.u32 %s676_s12, 3  ;;  %s545_s17 = sshll.u32 %s676_s12, 4 }
   0xe   : > { %s247_s20 = scalar_lea.vmem %s668_s1, %s540_s16  ;;  %s239_s23 = scalar_lea.vmem %s667_s0, %s545_s17  ;;  %v384_v13 = vand.u32 127, %v383_v12  ;;  %v386_v14 = vshrl.u32 %v383_v12, 7 }
   0xf   : > { %v265_v0 = vld [vmem:[%s247_s20] sm:$0xff]  ;;  %v264_v2 = vld [vmem:[%s239_s23 + $0x8] sm:$0xff]  ;;  %s262_s26 = scalar_lea.vmem %s670_s3, %s676_s12  ;;  %s253_s29 = scalar_lea.vmem %s669_s2, %s676_s12 }
  0x10   : > { %v263_v1 = vld [vmem:[%s239_s23] sm:$0xff]  ;;  %549 = vmatprep.subr.mxu0 %v265_v0  ;;  %v389_v15 = vadd.s32 4294967288, %v384_v13  ;;  %v387_v17 = vsub.s32 %v384_v13, %v386_v14 }
  0x11   : > { %551 = vmatprep.mubr.msk.f32.mxu0 %vm266_vm0, %v263_v1  ;;  %550 = vmatpush3.msra.mxu0 %v265_v0 }
  0x12   : > { %552 = vmatmul.mubr.msk.f32.vlgmr.msra.gmra.mxu0 %vm266_vm0, %v264_v2  ;;  %v392_v18 = vsub.s32 %v389_v15, %v386_v14 }
  0xd2   : > { %v553_v3 = vpop.f32.mrf.mxu0 }
  0xd4   : > { %v339_v4 = vpop.f32.mrf.mxu0 }
  0xd5   : > { %v348_v5 = vmin.f32 %v339_v4, %v553_v3  ;;  %377 = vmin.xlane.f32.xlu0 %v339_v4 }
  0xd7   : > { %v349_v6 = vrot.slane %v348_v5, 4 }
  0xd9   : > { %v350_v7 = vmin.f32 %v348_v5, %v349_v6  ;;  %379 = vmin.xlane.f32.xlu0 %v553_v3 }
  0xdb   : > { %v351_v8 = vrot.slane %v350_v7, 2 }
  0xdd   : > { %v352_v9 = vmin.f32 %v350_v7, %v351_v8 }
  0xdf   : > { %v353_v10 = vrot.slane %v352_v9, 1 }
  0xe1   : > { %v354_v11 = vmin.f32 %v352_v9, %v353_v10 }
  0xe3   : > { %355 = vst [vmem:[%s262_s26] sm:$0x1] %v354_v11 }
 0x15e   : > { %v378_v16 = vpop.xlane.xlu0 %377 }
 0x15f   : > { %v388_v20 = vrot.slane %v378_v16, %v387_v17 }
 0x162   : > { %v380_v19 = vpop.xlane.xlu0 %379 }
 0x163   : > { %v393_v21 = vrot.slane %v380_v19, %v392_v18 }
 0x165   : > { %v395_v22 = vsel %vm394_vm1, %v393_v21, %v388_v20 }
 0x166   : > { %398 = vst.msk [vmem:[%s253_s29] sm:$0x1] %vm397_vm2, %v395_v22 }
 0x167 PF: > { %s14_s14 = sadd.s32 1, %s600_s14   ;;  %s671_s12 = smov %s596_s13 }
 0x168   : > { %p11_p5 = scmp.ge.s32.totalorder %s14_s14, 4   ;;  %s672_s13 = smov %s674_s15 }
 0x16a   :  { %13 = sbr.rel (!%p11_p5) target bundleno = 2 (0x2), region = 85 }

</bundles_post_ra>
